<compile_context>
chip_gen: v5e
topology: v5e:2x2
jax: 0.10.0
libtpu: 0.0.40
codegen_flags: <defaults>
</compile_context>

<pallas_src>
import functools

import jax
import jax.numpy as jnp
from jax import lax
from jax.experimental import pallas as pl
from jax.experimental.pallas import tpu as pltpu

_LANE = 128


def _round_up(x, m):
    return ((x + m - 1) // m) * m


def _i32(v):
    """Python int -> wrapped int32 constant (two's complement)."""
    v &= 0xFFFFFFFF
    if v >= 1 << 31:
        v -= 1 << 32
    return jnp.int32(v)


def _hash32(x):
    """lowbias32-style integer hash; int32 arithmetic wraps (mod 2^32)."""
    x = x ^ lax.shift_right_logical(x, 16)
    x = x * _i32(0x7FEB352D)
    x = x ^ lax.shift_right_logical(x, 15)
    x = x * _i32(0x846CA68B)
    x = x ^ lax.shift_right_logical(x, 16)
    return x


def _make_mlp_kernel(nlayers, dropout_p, tile_rows, compute_dtype):
    """Fused per-row-tile body: drop -> matmul -> (relu -> drop -> matmul)*."""
    use_dropout = dropout_p > 0.0
    if use_dropout:
        thr_u = int(round(float(dropout_p) * 4294967296.0))
        thr_u = min(max(thr_u, 0), 4294967295)
        # signed threshold: keep iff hash_bits >= thr_signed  (keep prob = 1-p)
        thr_signed = max(min(thr_u - (1 << 31), (1 << 31) - 1), -(1 << 31))
        scale = 1.0 / (1.0 - float(dropout_p))

    def kernel(seed_ref, x_ref, *rest):
        w_refs = rest[:nlayers]
        out_ref = rest[nlayers]

        if use_dropout:
            seed = seed_ref[0]
            row_off = pl.program_id(0) * tile_rows  # global row of this tile

        def drop(v, site):
            if not use_dropout:
                return v
            # Per-(seed, layer) salt, then per-element counter hash.
            base = _hash32(seed + _i32((site + 1) * 0x9E3779B9))
            rows = lax.broadcasted_iota(jnp.int32, v.shape, 0) + row_off
            cols = lax.broadcasted_iota(jnp.int32, v.shape, 1)
            bits = _hash32(base + rows * _i32(0x01000193) + cols * _i32(0x85EBCA77))
            keep = bits >= jnp.int32(thr_signed)
            mask = jnp.where(keep, jnp.float32(scale), jnp.float32(0.0))
            return v * mask

        # Layer 0: drop(X) @ W0   (elementwise math in f32, matmul in compute_dtype)
        h = drop(x_ref[...].astype(jnp.float32), 0)
        h = jnp.dot(h.astype(compute_dtype), w_refs[0][...],
                    preferred_element_type=jnp.float32)

        # Layers 1..L-1: drop(relu(h)) @ Wi
        for li in range(1, nlayers):
            h = drop(jnp.maximum(h, 0.0), li)
            h = jnp.dot(h.astype(compute_dtype), w_refs[li][...],
                        preferred_element_type=jnp.float32)

        out_ref[...] = h.astype(out_ref.dtype)

    return kernel


@functools.partial(jax.jit, static_argnames=("dropout_p", "tile_rows", "compute_dtype"))
def mlp_forward(x, weights, seed, dropout_p=0.0, tile_rows=512,
                compute_dtype=jnp.bfloat16):
    """x: [N, F]; weights: tuple of [in, out] matrices (no bias); seed: int32."""
    nlayers = len(weights)
    N, F = x.shape
    num_classes = weights[-1].shape[1]
    cdt = jnp.dtype(compute_dtype)
    out_dt = jnp.dtype(x.dtype)

    # --- Pad hidden / class dims up to the 128-lane width (lane-dense matmuls
    #     and output stores). Zero padding is numerically exact.
    out_dims = [w.shape[1] for w in weights]
    out_pad = [_round_up(d, _LANE) for d in out_dims]
    padded = []
    for i, w in enumerate(weights):
        in_dim, out_dim = w.shape
        in_p = in_dim if i == 0 else out_pad[i - 1]
        wp = jnp.zeros((in_p, out_pad[i]), dtype=cdt)
        wp = wp.at[:in_dim, :out_dim].set(w.astype(cdt))
        padded.append(wp)
    c_pad = out_pad[-1]

    # Cast activations once in the wrapper (not per grid step inside the kernel).
    x_c = x.astype(cdt)

    # --- Row tiling (multiple of 8 sublanes; clipped to the padded row count).
    tr = max(8, min(int(tile_rows), _round_up(N, 8)))
    tr = _round_up(tr, 8)
    grid = (pl.cdiv(N, tr),)

    seed_arr = jnp.asarray(seed, dtype=jnp.int32).reshape(1)

    kernel = _make_mlp_kernel(nlayers, float(dropout_p), tr, cdt)

    # --- VMEM budget: resident weights + double-buffered x/out tiles + f32 work.
    w_bytes = sum(int(wp.size) * cdt.itemsize for wp in padded)
    x_tile_bytes = tr * F * cdt.itemsize
    o_tile_bytes = tr * c_pad * out_dt.itemsize
    act_bytes = 4 * tr * max([F] + out_pad) * 4
    vmem_limit = int(min(
        max(2 * (w_bytes + 2 * x_tile_bytes + 2 * o_tile_bytes) + act_bytes, 16 << 20),
        64 << 20))

    flops = 2 * N * sum(int(wp.shape[0]) * int(wp.shape[1]) for wp in padded)
    bytes_accessed = (int(x_c.size) * cdt.itemsize + w_bytes
                      + N * c_pad * out_dt.itemsize)

    grid_spec = pltpu.PrefetchScalarGridSpec(
        num_scalar_prefetch=1,                       # seed lives in SMEM
        grid=grid,
        in_specs=(
            [pl.BlockSpec((tr, F), lambda i, s: (i, 0))]               # X tile
            + [pl.BlockSpec(wp.shape, lambda i, s: (0, 0))             # resident W
               for wp in padded]
        ),
        out_specs=pl.BlockSpec((tr, c_pad), lambda i, s: (i, 0)),
    )

    out_padded = pl.pallas_call(
        kernel,
        out_shape=jax.ShapeDtypeStruct((N, c_pad), x.dtype),
        grid_spec=grid_spec,
        compiler_params=pltpu.CompilerParams(
            dimension_semantics=("parallel",),
            vmem_limit_bytes=vmem_limit,
        ),
        cost_estimate=pl.CostEstimate(
            flops=flops, transcendentals=0, bytes_accessed=bytes_accessed),
    )(seed_arr, x_c, *padded)

    return out_padded[:, :num_classes]


def init_mlp_params(key, num_features, num_classes, hidden_size, nlayers):
    """Deterministic weight init matching the module's layer shapes (bias=False)."""
    dims = [num_features] + [hidden_size] * (nlayers - 1) + [num_classes]
    weights = []
    for i in range(nlayers):
        key, sub = jax.random.split(key)
        bound = 1.0 / (dims[i] ** 0.5)
        # stored as [in, out]  (torch nn.Linear weight is [out, in])
        w = jax.random.uniform(sub, (dims[i], dims[i + 1]),
                               dtype=jnp.float32, minval=-bound, maxval=bound)
        weights.append(w)
    return tuple(weights)


def mlp_reference(x, weights):
    """Pure-JAX reference (dropout disabled) for correctness check."""
    h = x @ weights[0]
    for w in weights[1:]:
        h = jnp.maximum(h, 0.0) @ w
    return h


if __name__ == "__main__":
    # Small shapes consistent with the module's forward.
    N = 256
    num_features = 64
    hidden_size = 64
    num_classes = 16
    nlayers = 3
    dropout = 0.5

    key = jax.random.PRNGKey(0)
    kx, kw = jax.random.split(key)
    x = jax.random.normal(kx, (N, num_features), dtype=jnp.float32)
    weights = init_mlp_params(kw, num_features, num_classes, hidden_size, nlayers)

    # Correctness (dropout disabled, f32 compute) against the pure-JAX reference.
    out_nodrop = mlp_forward(x, weights, 0, dropout_p=0.0, tile_rows=128,
                             compute_dtype=jnp.float32)
    jax.block_until_ready(out_nodrop)
    ref = mlp_reference(x, weights)
    assert out_nodrop.shape == (N, num_classes)
    assert jnp.allclose(out_nodrop, ref, atol=5e-2, rtol=5e-2), "mismatch vs reference"

    # Training-mode forward with dropout, bf16 matmul operands, f32 accumulation.
    out1 = mlp_forward(x, weights, 1234, dropout_p=dropout, tile_rows=128,
                       compute_dtype=jnp.bfloat16)
    out2 = mlp_forward(x, weights, 1234, dropout_p=dropout, tile_rows=128,
                       compute_dtype=jnp.bfloat16)
    jax.block_until_ready((out1, out2))
    assert out1.shape == (N, num_classes)
    assert bool(jnp.all(jnp.isfinite(out1)))
    assert bool(jnp.array_equal(out1, out2)), "dropout must be deterministic per seed"

    print("KERNEL_OK")
</pallas_src>

<mosaic_0001>
module attributes {stable_mosaic.version = 11 : i64} {
  func.func @kernel(%arg0: i32, %arg1: memref<1xi32, #tpu.memory_space<smem>>, %arg2: memref<128x64xf32, #tpu.memory_space<vmem>>, %arg3: memref<64x128xf32, #tpu.memory_space<vmem>>, %arg4: memref<128x128xf32, #tpu.memory_space<vmem>>, %arg5: memref<128x128xf32, #tpu.memory_space<vmem>>, %arg6: memref<128x128xf32, #tpu.memory_space<vmem>>) attributes {dimension_semantics = [#tpu.dimension_semantics<parallel>], iteration_bounds = array<i64: 2>, scalar_prefetch = 1 : i64, scratch_operands = 0 : i64, tpu.core_type = #tpu.core_type<tc>, window_params = [{transform_indices = @transform_0, window_bounds = array<i64: 128, 64>}, {pipeline_mode = #tpu.pipeline_mode<synchronous>, transform_indices = @transform_1, window_bounds = array<i64: 64, 128>}, {pipeline_mode = #tpu.pipeline_mode<synchronous>, transform_indices = @transform_2, window_bounds = array<i64: 128, 128>}, {pipeline_mode = #tpu.pipeline_mode<synchronous>, transform_indices = @transform_3, window_bounds = array<i64: 128, 128>}, {transform_indices = @transform_4, window_bounds = array<i64: 128, 128>}]} {
    %c0 = arith.constant 0 : index
    %c0_0 = arith.constant 0 : index
    %0 = vector.load %arg2[%c0, %c0_0] : memref<128x64xf32, #tpu.memory_space<vmem>>, vector<128x64xf32>
    %c0_1 = arith.constant 0 : index
    %c0_2 = arith.constant 0 : index
    %1 = vector.load %arg3[%c0_1, %c0_2] : memref<64x128xf32, #tpu.memory_space<vmem>>, vector<64x128xf32>
    %cst = arith.constant dense<0.000000e+00> : vector<128x128xf32>
    %2 = tpu.matmul %0, %1, %cst {dimension_numbers = #tpu.dot_dimension_numbers<[1], [0], [0], [1], [0, 0, 1, 1], [], []>} : vector<128x64xf32>, vector<64x128xf32>, vector<128x128xf32> -> vector<128x128xf32>
    %cst_3 = arith.constant 0.000000e+00 : f32
    %3 = vector.broadcast %cst_3 : f32 to vector<128x128xf32>
    %4 = arith.maximumf %2, %3 : vector<128x128xf32>
    %c0_4 = arith.constant 0 : index
    %c0_5 = arith.constant 0 : index
    %5 = vector.load %arg4[%c0_4, %c0_5] : memref<128x128xf32, #tpu.memory_space<vmem>>, vector<128x128xf32>
    %cst_6 = arith.constant dense<0.000000e+00> : vector<128x128xf32>
    %6 = tpu.matmul %4, %5, %cst_6 {dimension_numbers = #tpu.dot_dimension_numbers<[1], [0], [0], [1], [0, 0, 1, 1], [], []>} : vector<128x128xf32>, vector<128x128xf32>, vector<128x128xf32> -> vector<128x128xf32>
    %cst_7 = arith.constant 0.000000e+00 : f32
    %7 = vector.broadcast %cst_7 : f32 to vector<128x128xf32>
    %8 = arith.maximumf %6, %7 : vector<128x128xf32>
    %c0_8 = arith.constant 0 : index
    %c0_9 = arith.constant 0 : index
    %9 = vector.load %arg5[%c0_8, %c0_9] : memref<128x128xf32, #tpu.memory_space<vmem>>, vector<128x128xf32>
    %cst_10 = arith.constant dense<0.000000e+00> : vector<128x128xf32>
    %10 = tpu.matmul %8, %9, %cst_10 {dimension_numbers = #tpu.dot_dimension_numbers<[1], [0], [0], [1], [0, 0, 1, 1], [], []>} : vector<128x128xf32>, vector<128x128xf32>, vector<128x128xf32> -> vector<128x128xf32>
    %c0_11 = arith.constant 0 : index
    %c0_12 = arith.constant 0 : index
    %11 = vector.load %arg6[%c0_11, %c0_12] : memref<128x128xf32, #tpu.memory_space<vmem>>, vector<128x128xf32>
    tpu.vector_store %arg6[%c0_11, %c0_12], %10 {strides = array<i32>} : memref<128x128xf32, #tpu.memory_space<vmem>>, vector<128x128xf32>,
    return
  }
  func.func @transform_0(%arg0: i32, %arg1: memref<1xi32, #tpu.memory_space<smem>>) -> (i32, i32) {
    %c0_i32 = arith.constant 0 : i32
    %c0_i32_0 = arith.constant 0 : i32
    return %arg0, %c0_i32 : i32, i32
  }
  func.func @transform_1(%arg0: i32, %arg1: memref<1xi32, #tpu.memory_space<smem>>) -> (i32, i32) {
    %c0_i32 = arith.constant 0 : i32
    %c0_i32_0 = arith.constant 0 : i32
    %c0_i32_1 = arith.constant 0 : i32
    return %c0_i32, %c0_i32_0 : i32, i32
  }
  func.func @transform_2(%arg0: i32, %arg1: memref<1xi32, #tpu.memory_space<smem>>) -> (i32, i32) {
    %c0_i32 = arith.constant 0 : i32
    %c0_i32_0 = arith.constant 0 : i32
    %c0_i32_1 = arith.constant 0 : i32
    return %c0_i32, %c0_i32_0 : i32, i32
  }
  func.func @transform_3(%arg0: i32, %arg1: memref<1xi32, #tpu.memory_space<smem>>) -> (i32, i32) {
    %c0_i32 = arith.constant 0 : i32
    %c0_i32_0 = arith.constant 0 : i32
    %c0_i32_1 = arith.constant 0 : i32
    return %c0_i32, %c0_i32_0 : i32, i32
  }
  func.func @transform_4(%arg0: i32, %arg1: memref<1xi32, #tpu.memory_space<smem>>) -> (i32, i32) {
    %c0_i32 = arith.constant 0 : i32
    %c0_i32_0 = arith.constant 0 : i32
    return %arg0, %c0_i32 : i32, i32
  }
}

</mosaic_0001>

<bundles_post_ra>
// kernel: mlp_forward.1
= control target key start
LH: loop header
LB: loop body
LE: loop exit
PB: predicated region body
PF: predicated region fallthrough
CT: control target
= control target key end

     0   :  { %s712_s18 = smov 0   ;;  %s908_s0 = inlined_call_operand.<no memory space> [shape: s32[1], index: 0, kind: input, shape index: {}]   ;;  %s909_s1 = inlined_call_operand.vmem [shape: f32[256,64], index: 1, kind: input, shape index: {}]   ;;  %s910_s2 = inlined_call_operand.vmem [shape: f32[64,128], index: 2, kind: input, shape index: {}]   ;;  %s911_s3 = inlined_call_operand.vmem [shape: f32[128,128], index: 3, kind: input, shape index: {}]   ;;  %s912_s4 = inlined_call_operand.vmem [shape: f32[128,128], index: 4, kind: input, shape index: {}]   ;;  %s913_s5 = inlined_call_operand.vmem [shape: f32[256,128], index: 5, kind: output, shape index: {}]  }
   0x1 LB: > { %s607_s0 = sadd.s32 4294967295, %s680_s18   ;;  %p611_p0 = scmp.ge.s32.totalorder %s680_s18, 1  ;;  %s680_s18 = sphi %s712_s18, %s16_s18  }
   0x2   : > { %p165_p1 = scmp.lt.s32.totalorder %s680_s18, 3 }
   0x4   : > { %p166_p2 = pnand %p611_p0, %p165_p1 }
   0x5   : > { %s612_s23 = sshll.u32 (!%p166_p2), %s607_s0, 4 }
   0x6   : > { %169 = sbr.rel (%p166_p2) target bundleno = 542 (0x21e), region = 36  ;;  %p192_p3 = scmp.lt.s32.totalorder (!%p166_p2), %s612_s23, 31 }
   0xb   : > { %v226_v0 = vld [vmem:[%s910_s2 + $0x38] sm:$0xff]  ;;  %v225_v1 = vld [vmem:[%s910_s2 + $0x30] sm:$0xff]  ;;  %v224_v2 = vld [vmem:[%s910_s2 + $0x28] sm:$0xff]  ;;  %s915_s23 = smov (!%p192_p3, %s612_s23), 31  ;;  %vm227_vm0 = vcmask 523264  }
   0xc   : > { %284 = vmatpush.msra.mxu0 %v226_v0  ;;  %v223_v3 = vld [vmem:[%s910_s2 + $0x20] sm:$0xff]  ;;  %v222_v4 = vld [vmem:[%s910_s2 + $0x18] sm:$0xff]  ;;  %s613_s30 = sshll.u32 %s915_s23, 3  ;;  %v221_v5 = vld [vmem:[%s910_s2 + $0x10] sm:$0xff] }
   0xd   : > { %v220_v6 = vld [vmem:[%s910_s2 + $0x8] sm:$0xff]  ;;  %s749_s12 = scalar_lea.vmem %s909_s1, %s613_s30  ;;  %v219_v7 = vld [vmem:[%s910_s2] sm:$0xff]  ;;  %v372_v17 = vld [vmem:[%s911_s3 + $0x78] sm:$0xff]  ;;  %s887_s13 = scalar_lea.vmem %s913_s5, %s613_s30 }
   0xe   : > { %285 = vmatpush.msra.mxu0 %v225_v1  ;;  %v203_v8 = vld [vmem:[%s749_s12] sm:$0xff]  ;;  %v204_v9 = vld [vmem:[%s749_s12 + $0x8] sm:$0xff]  ;;  %v205_v10 = vld [vmem:[%s749_s12 + $0x10] sm:$0xff]  ;;  %373 = vmatpush.msra.mxu1 %v372_v17 }
   0xf   : > { %v206_v11 = vld [vmem:[%s749_s12 + $0x18] sm:$0xff]  ;;  %v207_v12 = vld [vmem:[%s749_s12 + $0x20] sm:$0xff]  ;;  %v208_v13 = vld [vmem:[%s749_s12 + $0x28] sm:$0xff]  ;;  %634 = vmatpush.msra.mxu3 %v372_v17 }
  0x10   : > { %286 = vmatpush.msra.mxu0 %v224_v2  ;;  %v209_v14 = vld [vmem:[%s749_s12 + $0x30] sm:$0xff]  ;;  %v210_v15 = vld [vmem:[%s749_s12 + $0x38] sm:$0xff]  ;;  %v211_v16 = vld [vmem:[%s749_s12 + $0x40] sm:$0xff] }
  0x11   : > { %v371_v18 = vld [vmem:[%s911_s3 + $0x70] sm:$0xff]  ;;  %v370_v19 = vld [vmem:[%s911_s3 + $0x68] sm:$0xff]  ;;  %v369_v20 = vld [vmem:[%s911_s3 + $0x60] sm:$0xff] }
  0x12   : > { %287 = vmatpush.msra.mxu0 %v223_v3  ;;  %374 = vmatpush.msra.mxu1 %v371_v18  ;;  %v212_v21 = vld [vmem:[%s749_s12 + $0x48] sm:$0xff]  ;;  %v368_v22 = vld [vmem:[%s911_s3 + $0x58] sm:$0xff]  ;;  %v367_v23 = vld [vmem:[%s911_s3 + $0x50] sm:$0xff] }
  0x13   : > { %635 = vmatpush.msra.mxu3 %v371_v18  ;;  %v366_v24 = vld [vmem:[%s911_s3 + $0x48] sm:$0xff]  ;;  %v365_v25 = vld [vmem:[%s911_s3 + $0x40] sm:$0xff]  ;;  %v213_v26 = vld [vmem:[%s749_s12 + $0x50] sm:$0xff] }
  0x14   : > { %288 = vmatpush.msra.mxu0 %v222_v4  ;;  %375 = vmatpush.msra.mxu1 %v370_v19  ;;  %v364_v27 = vld [vmem:[%s911_s3 + $0x38] sm:$0xff]  ;;  %v363_v28 = vld [vmem:[%s911_s3 + $0x30] sm:$0xff]  ;;  %v362_v29 = vld [vmem:[%s911_s3 + $0x28] sm:$0xff] }
  0x15   : > { %636 = vmatpush.msra.mxu3 %v370_v19  ;;  %v361_v30 = vld [vmem:[%s911_s3 + $0x20] sm:$0xff]  ;;  %v214_v31 = vld [vmem:[%s749_s12 + $0x58] sm:$0xff]  ;;  %v359_v33 = vld [vmem:[%s911_s3 + $0x10] sm:$0xff] }
  0x16   : > { %289 = vmatpush.msra.mxu0 %v221_v5  ;;  %376 = vmatpush.msra.mxu1 %v369_v20  ;;  %v360_v32 = vld [vmem:[%s911_s3 + $0x18] sm:$0xff]  ;;  %v358_v34 = vld [vmem:[%s911_s3 + $0x8] sm:$0xff]  ;;  %v215_v35 = vld [vmem:[%s749_s12 + $0x60] sm:$0xff] }
  0x17   : > { %637 = vmatpush.msra.mxu3 %v369_v20  ;;  %v357_v36 = vld [vmem:[%s911_s3] sm:$0xff]  ;;  %v216_v37 = vld [vmem:[%s749_s12 + $0x68] sm:$0xff]  ;;  %v217_v38 = vld [vmem:[%s749_s12 + $0x70] sm:$0xff] }
  0x18   : > { %290 = vmatpush.msra.mxu0 %v220_v6  ;;  %377 = vmatpush.msra.mxu1 %v368_v22  ;;  %v218_v39 = vld [vmem:[%s749_s12 + $0x78] sm:$0xff]  ;;  %v468_v59 = vld [vmem:[%s912_s4 + $0x70] sm:$0xff]  ;;  %v467_v60 = vld [vmem:[%s912_s4 + $0x68] sm:$0xff] }
  0x19   : > { %638 = vmatpush.msra.mxu3 %v368_v22  ;;  %v469_v58 = vld [vmem:[%s912_s4 + $0x78] sm:$0xff]  ;;  %v466_v63 = vld [vmem:[%s912_s4 + $0x60] sm:$0xff]  ;;  %v464_v1 = vld [vmem:[%s912_s4 + $0x50] sm:$0xff] }
  0x1a   : > { %291 = vmatpush.msra.mxu0 %v219_v7  ;;  %378 = vmatpush.msra.mxu1 %v367_v23  ;;  %v465_v0 = vld [vmem:[%s912_s4 + $0x58] sm:$0xff]  ;;  %v463_v2 = vld [vmem:[%s912_s4 + $0x48] sm:$0xff]  ;;  %v462_v5 = vld [vmem:[%s912_s4 + $0x40] sm:$0xff] }
  0x1b   : > { %616 = vmatmul.msk.f32.vlgmr.msra.gmra.mxu0 %vm227_vm0, %v203_v8  ;;  %639 = vmatpush.msra.mxu3 %v367_v23  ;;  %v461_v6 = vld [vmem:[%s912_s4 + $0x38] sm:$0xff]  ;;  %v460_v7 = vld [vmem:[%s912_s4 + $0x30] sm:$0xff]  ;;  %v459_v8 = vld [vmem:[%s912_s4 + $0x28] sm:$0xff] }
  0x1c   : > { %379 = vmatpush.msra.mxu1 %v366_v24  ;;  %470 = vmatpush.msra.mxu2 %v469_v58  ;;  %v454_v17 = vld [vmem:[%s912_s4] sm:$0xff] }
  0x1d   : > { %640 = vmatpush.msra.mxu3 %v366_v24 }
  0x1e   : > { %380 = vmatpush.msra.mxu1 %v365_v25  ;;  %471 = vmatpush.msra.mxu2 %v468_v59 }
  0x1f   : > { %641 = vmatpush.msra.mxu3 %v365_v25 }
  0x20   : > { %381 = vmatpush.msra.mxu1 %v364_v27  ;;  %472 = vmatpush.msra.mxu2 %v467_v60 }
  0x21   : > { %642 = vmatpush.msra.mxu3 %v364_v27 }
  0x22   : > { %382 = vmatpush.msra.mxu1 %v363_v28  ;;  %473 = vmatpush.msra.mxu2 %v466_v63 }
  0x23   : > { %617 = vmatmul.msk.f32.gmra.mxu0 %vm227_vm0, %v204_v9  ;;  %643 = vmatpush.msra.mxu3 %v363_v28 }
  0x24   : > { %383 = vmatpush.msra.mxu1 %v362_v29  ;;  %474 = vmatpush.msra.mxu2 %v465_v0 }
  0x25   : > { %644 = vmatpush.msra.mxu3 %v362_v29 }
  0x26   : > { %384 = vmatpush.msra.mxu1 %v361_v30  ;;  %475 = vmatpush.msra.mxu2 %v464_v1 }
  0x27   : > { %645 = vmatpush.msra.mxu3 %v361_v30 }
  0x28   : > { %385 = vmatpush.msra.mxu1 %v360_v32  ;;  %476 = vmatpush.msra.mxu2 %v463_v2 }
  0x29   : > { %646 = vmatpush.msra.mxu3 %v360_v32 }
  0x2a   : > { %386 = vmatpush.msra.mxu1 %v359_v33  ;;  %477 = vmatpush.msra.mxu2 %v462_v5 }
  0x2b   : > { %618 = vmatmul.msk.f32.gmra.mxu0 %vm227_vm0, %v205_v10  ;;  %647 = vmatpush.msra.mxu3 %v359_v33 }
  0x2c   : > { %387 = vmatpush.msra.mxu1 %v358_v34  ;;  %478 = vmatpush.msra.mxu2 %v461_v6 }
  0x2d   : > { %648 = vmatpush.msra.mxu3 %v358_v34 }
  0x2e   : > { %388 = vmatpush.msra.mxu1 %v357_v36  ;;  %479 = vmatpush.msra.mxu2 %v460_v7 }
  0x2f   : > { %649 = vmatpush.msra.mxu3 %v357_v36 }
  0x30   : > { %480 = vmatpush.msra.mxu2 %v459_v8 }
  0x31   : > { %650 = vmatpush.msrb.mxu3 %v469_v58 }
  0x33   : > { %619 = vmatmul.msk.f32.gmra.mxu0 %vm227_vm0, %v206_v11  ;;  %651 = vmatpush.msrb.mxu3 %v468_v59  ;;  %v458_v11 = vld [vmem:[%s912_s4 + $0x20] sm:$0xff] }
  0x34   : > { %481 = vmatpush.msra.mxu2 %v458_v11 }
  0x35   : > { %652 = vmatpush.msrb.mxu3 %v467_v60 }
  0x37   : > { %653 = vmatpush.msrb.mxu3 %v466_v63 }
  0x39   : > { %654 = vmatpush.msrb.mxu3 %v465_v0 }
  0x3b   : > { %620 = vmatmul.msk.f32.gmra.mxu0 %vm227_vm0, %v207_v12  ;;  %655 = vmatpush.msrb.mxu3 %v464_v1  ;;  %v457_v12 = vld [vmem:[%s912_s4 + $0x18] sm:$0xff] }
  0x3c   : > { %482 = vmatpush.msra.mxu2 %v457_v12 }
  0x3d   : > { %656 = vmatpush.msrb.mxu3 %v463_v2 }
  0x3f   : > { %657 = vmatpush.msrb.mxu3 %v462_v5 }
  0x41   : > { %658 = vmatpush.msrb.mxu3 %v461_v6 }
  0x43   : > { %621 = vmatmul.msk.f32.gmra.mxu0 %vm227_vm0, %v208_v13  ;;  %659 = vmatpush.msrb.mxu3 %v460_v7  ;;  %v456_v13 = vld [vmem:[%s912_s4 + $0x10] sm:$0xff] }
  0x44   : > { %483 = vmatpush.msra.mxu2 %v456_v13 }
  0x45   : > { %660 = vmatpush.msrb.mxu3 %v459_v8 }
  0x47   : > { %661 = vmatpush.msrb.mxu3 %v458_v11 }
  0x49   : > { %662 = vmatpush.msrb.mxu3 %v457_v12 }
  0x4b   : > { %622 = vmatmul.msk.f32.gmra.mxu0 %vm227_vm0, %v209_v14  ;;  %663 = vmatpush.msrb.mxu3 %v456_v13  ;;  %v455_v14 = vld [vmem:[%s912_s4 + $0x8] sm:$0xff] }
  0x4c   : > { %484 = vmatpush.msra.mxu2 %v455_v14 }
  0x4d   : > { %664 = vmatpush.msrb.mxu3 %v455_v14 }
  0x4e   : > { %485 = vmatpush.msra.mxu2 %v454_v17 }
  0x4f   : > { %665 = vmatpush.msrb.mxu3 %v454_v17 }
  0x53   : > { %623 = vmatmul.msk.f32.gmra.mxu0 %vm227_vm0, %v210_v15 }
  0x5b   : > { %624 = vmatmul.msk.f32.gmra.mxu0 %vm227_vm0, %v211_v16 }
  0x63   : > { %625 = vmatmul.msk.f32.gmra.mxu0 %vm227_vm0, %v212_v21 }
  0x6b   : > { %626 = vmatmul.msk.f32.gmra.mxu0 %vm227_vm0, %v213_v26 }
  0x73   : > { %627 = vmatmul.msk.f32.gmra.mxu0 %vm227_vm0, %v214_v31 }
  0x7b   : > { %628 = vmatmul.msk.f32.gmra.mxu0 %vm227_vm0, %v215_v35 }
  0x83   : > { %629 = vmatmul.msk.f32.gmra.mxu0 %vm227_vm0, %v216_v37 }
  0x8b   : > { %630 = vmatmul.msk.f32.gmra.mxu0 %vm227_vm0, %v217_v38 }
  0x93   : > { %631 = vmatmul.msk.f32.gmra.mxu0 %vm227_vm0, %v218_v39 }
  0x98   : > { %v293_v40 = vpop.f32.mrf.mxu0 }
  0x99   : > { %v341_v41 = vmax.f32 %v293_v40, 0.0 }
  0x9b   : > { %389 = vmatmul.f32.vlgmr.msra.gmra.mxu1 %v341_v41 }
  0xa0   : > { %v296_v42 = vpop.f32.mrf.mxu0 }
  0xa1   : > { %v342_v43 = vmax.f32 %v296_v42, 0.0 }
  0xa3   : > { %392 = vmatmul.f32.gmra.mxu1 %v342_v43 }
  0xa8   : > { %v299_v44 = vpop.f32.mrf.mxu0 }
  0xa9   : > { %v343_v45 = vmax.f32 %v299_v44, 0.0 }
  0xab   : > { %395 = vmatmul.f32.gmra.mxu1 %v343_v45 }
  0xb0   : > { %v302_v46 = vpop.f32.mrf.mxu0 }
  0xb1   : > { %v344_v47 = vmax.f32 %v302_v46, 0.0 }
  0xb3   : > { %398 = vmatmul.f32.gmra.mxu1 %v344_v47 }
  0xb8   : > { %v305_v48 = vpop.f32.mrf.mxu0 }
  0xb9   : > { %v345_v49 = vmax.f32 %v305_v48, 0.0 }
  0xbb   : > { %401 = vmatmul.f32.gmra.mxu1 %v345_v49 }
  0xc0   : > { %v308_v50 = vpop.f32.mrf.mxu0 }
  0xc1   : > { %v346_v51 = vmax.f32 %v308_v50, 0.0 }
  0xc3   : > { %404 = vmatmul.f32.gmra.mxu1 %v346_v51 }
  0xc8   : > { %v311_v52 = vpop.f32.mrf.mxu0 }
  0xc9   : > { %v347_v53 = vmax.f32 %v311_v52, 0.0 }
  0xcb   : > { %407 = vmatmul.f32.gmra.mxu1 %v347_v53 }
  0xd0   : > { %v314_v54 = vpop.f32.mrf.mxu0 }
  0xd1   : > { %v348_v55 = vmax.f32 %v314_v54, 0.0 }
  0xd3   : > { %410 = vmatmul.f32.gmra.mxu1 %v348_v55 }
  0xd8   : > { %v317_v56 = vpop.f32.mrf.mxu0 }
  0xd9   : > { %v349_v57 = vmax.f32 %v317_v56, 0.0 }
  0xdb   : > { %413 = vmatmul.f32.gmra.mxu1 %v349_v57 }
  0xe0   : > { %v320_v61 = vpop.f32.mrf.mxu0 }
  0xe1   : > { %v350_v62 = vmax.f32 %v320_v61, 0.0 }
  0xe3   : > { %416 = vmatmul.f32.gmra.mxu1 %v350_v62 }
  0xe8   : > { %v323_v3 = vpop.f32.mrf.mxu0 }
  0xe9   : > { %v351_v4 = vmax.f32 %v323_v3, 0.0 }
  0xeb   : > { %419 = vmatmul.f32.gmra.mxu1 %v351_v4 }
  0xf0   : > { %v326_v9 = vpop.f32.mrf.mxu0 }
  0xf1   : > { %v352_v10 = vmax.f32 %v326_v9, 0.0 }
  0xf3   : > { %422 = vmatmul.f32.gmra.mxu1 %v352_v10 }
  0xf8   : > { %v329_v15 = vpop.f32.mrf.mxu0 }
  0xf9   : > { %v353_v16 = vmax.f32 %v329_v15, 0.0 }
  0xfb   : > { %425 = vmatmul.f32.vlgmr.msra.gmra.mxu3 %v353_v16 }
 0x100   : > { %v332_v18 = vpop.f32.mrf.mxu0 }
 0x101   : > { %v354_v19 = vmax.f32 %v332_v18, 0.0 }
 0x103   : > { %428 = vmatmul.f32.gmra.mxu3 %v354_v19 }
 0x108   : > { %v335_v20 = vpop.f32.mrf.mxu0 }
 0x109   : > { %v355_v21 = vmax.f32 %v335_v20, 0.0 }
 0x10b   : > { %431 = vmatmul.f32.gmra.mxu3 %v355_v21 }
 0x110   : > { %v338_v22 = vpop.f32.mrf.mxu0 }
 0x111   : > { %v356_v23 = vmax.f32 %v338_v22, 0.0 }
 0x113   : > { %434 = vmatmul.f32.gmra.mxu3 %v356_v23 }
 0x118   : > { %v390_v24 = vpop.f32.mrf.mxu1 }
 0x119   : > { %v438_v25 = vmax.f32 %v390_v24, 0.0 }
 0x11b   : > { %486 = vmatmul.f32.vlgmr.msra.gmra.mxu2 %v438_v25 }
 0x120   : > { %v393_v26 = vpop.f32.mrf.mxu1 }
 0x121   : > { %v439_v27 = vmax.f32 %v393_v26, 0.0 }
 0x123   : > { %489 = vmatmul.f32.gmra.mxu2 %v439_v27 }
 0x128   : > { %v396_v28 = vpop.f32.mrf.mxu1 }
 0x129   : > { %v440_v29 = vmax.f32 %v396_v28, 0.0 }
 0x12b   : > { %492 = vmatmul.f32.gmra.mxu2 %v440_v29 }
 0x130   : > { %v399_v30 = vpop.f32.mrf.mxu1 }
 0x131   : > { %v441_v31 = vmax.f32 %v399_v30, 0.0 }
 0x133   : > { %495 = vmatmul.f32.gmra.mxu2 %v441_v31 }
 0x138   : > { %v402_v32 = vpop.f32.mrf.mxu1 }
 0x139   : > { %v442_v33 = vmax.f32 %v402_v32, 0.0 }
 0x13b   : > { %498 = vmatmul.f32.gmra.mxu2 %v442_v33 }
 0x140   : > { %v405_v34 = vpop.f32.mrf.mxu1 }
 0x141   : > { %v443_v35 = vmax.f32 %v405_v34, 0.0 }
 0x143   : > { %501 = vmatmul.f32.gmra.mxu2 %v443_v35 }
 0x148   : > { %v408_v36 = vpop.f32.mrf.mxu1 }
 0x149   : > { %v444_v37 = vmax.f32 %v408_v36, 0.0 }
 0x14b   : > { %504 = vmatmul.f32.gmra.mxu2 %v444_v37 }
 0x150   : > { %v411_v38 = vpop.f32.mrf.mxu1 }
 0x151   : > { %v445_v39 = vmax.f32 %v411_v38, 0.0 }
 0x153   : > { %507 = vmatmul.f32.gmra.mxu2 %v445_v39 }
 0x158   : > { %v414_v40 = vpop.f32.mrf.mxu1 }
 0x159   : > { %v446_v41 = vmax.f32 %v414_v40, 0.0 }
 0x15b   : > { %510 = vmatmul.f32.gmra.mxu2 %v446_v41 }
 0x160   : > { %v417_v42 = vpop.f32.mrf.mxu1 }
 0x161   : > { %v447_v43 = vmax.f32 %v417_v42, 0.0 }
 0x163   : > { %513 = vmatmul.f32.gmra.mxu2 %v447_v43 }
 0x168   : > { %v420_v44 = vpop.f32.mrf.mxu1 }
 0x169   : > { %v448_v45 = vmax.f32 %v420_v44, 0.0 }
 0x16b   : > { %516 = vmatmul.f32.gmra.mxu2 %v448_v45 }
 0x170   : > { %v423_v46 = vpop.f32.mrf.mxu1 }
 0x171   : > { %v449_v47 = vmax.f32 %v423_v46, 0.0 }
 0x173   : > { %519 = vmatmul.f32.gmra.mxu2 %v449_v47 }
 0x17e   : > { %v426_v48 = vpop.f32.mrf.mxu3 }
 0x17f   : > { %v450_v49 = vmax.f32 %v426_v48, 0.0 }
 0x181   : > { %522 = vmatmul.f32.vlgmr.msrb.gmra.mxu3 %v450_v49 }
 0x186   : > { %v429_v50 = vpop.f32.mrf.mxu3 }
 0x187   : > { %v451_v51 = vmax.f32 %v429_v50, 0.0 }
 0x189   : > { %525 = vmatmul.f32.gmra.mxu3 %v451_v51 }
 0x18e   : > { %v432_v52 = vpop.f32.mrf.mxu3 }
 0x18f   : > { %v452_v53 = vmax.f32 %v432_v52, 0.0 }
 0x191   : > { %528 = vmatmul.f32.gmra.mxu3 %v452_v53 }
 0x196   : > { %v435_v54 = vpop.f32.mrf.mxu3 }
 0x197   : > { %v453_v55 = vmax.f32 %v435_v54, 0.0 }
 0x199   : > { %531 = vmatmul.f32.gmra.mxu3 %v453_v55 }
 0x19e   : > { %v487_v56 = vpop.f32.mrf.mxu2 }
 0x19f   : > { %535 = vst [vmem:[%s887_s13] sm:$0xff] %v487_v56 }
 0x1a6   : > { %v490_v57 = vpop.f32.mrf.mxu2 }
 0x1a7   : > { %536 = vst [vmem:[%s887_s13 + $0x8] sm:$0xff] %v490_v57 }
 0x1ae   : > { %v493_v58 = vpop.f32.mrf.mxu2 }
 0x1af   : > { %537 = vst [vmem:[%s887_s13 + $0x10] sm:$0xff] %v493_v58 }
 0x1b6   : > { %v496_v59 = vpop.f32.mrf.mxu2 }
 0x1b7   : > { %538 = vst [vmem:[%s887_s13 + $0x18] sm:$0xff] %v496_v59 }
 0x1be   : > { %v499_v60 = vpop.f32.mrf.mxu2 }
 0x1bf   : > { %539 = vst [vmem:[%s887_s13 + $0x20] sm:$0xff] %v499_v60 }
 0x1c6   : > { %v502_v61 = vpop.f32.mrf.mxu2 }
 0x1c7   : > { %540 = vst [vmem:[%s887_s13 + $0x28] sm:$0xff] %v502_v61 }
 0x1ce   : > { %v505_v62 = vpop.f32.mrf.mxu2 }
 0x1cf   : > { %541 = vst [vmem:[%s887_s13 + $0x30] sm:$0xff] %v505_v62 }
 0x1d6   : > { %v508_v63 = vpop.f32.mrf.mxu2 }
 0x1d7   : > { %542 = vst [vmem:[%s887_s13 + $0x38] sm:$0xff] %v508_v63 }
 0x1de   : > { %v511_v0 = vpop.f32.mrf.mxu2 }
 0x1df   : > { %543 = vst [vmem:[%s887_s13 + $0x40] sm:$0xff] %v511_v0 }
 0x1e6   : > { %v514_v1 = vpop.f32.mrf.mxu2 }
 0x1e7   : > { %544 = vst [vmem:[%s887_s13 + $0x48] sm:$0xff] %v514_v1 }
 0x1ee   : > { %v517_v2 = vpop.f32.mrf.mxu2 }
 0x1ef   : > { %545 = vst [vmem:[%s887_s13 + $0x50] sm:$0xff] %v517_v2 }
 0x1f6   : > { %v520_v3 = vpop.f32.mrf.mxu2 }
 0x1f7   : > { %546 = vst [vmem:[%s887_s13 + $0x58] sm:$0xff] %v520_v3 }
 0x204   : > { %v523_v4 = vpop.f32.mrf.mxu3 }
 0x205   : > { %547 = vst [vmem:[%s887_s13 + $0x60] sm:$0xff] %v523_v4 }
 0x20c   : > { %v526_v5 = vpop.f32.mrf.mxu3 }
 0x20d   : > { %548 = vst [vmem:[%s887_s13 + $0x68] sm:$0xff] %v526_v5 }
 0x214   : > { %v529_v6 = vpop.f32.mrf.mxu3 }
 0x215   : > { %549 = vst [vmem:[%s887_s13 + $0x70] sm:$0xff] %v529_v6 }
 0x21c   : > { %v532_v7 = vpop.f32.mrf.mxu3 }
 0x21d   : > { %550 = vst [vmem:[%s887_s13 + $0x78] sm:$0xff] %v532_v7 }
 0x21e PF: > { %s16_s18 = sadd.s32 1, %s680_s18  }
 0x21f   : > { %p13_p4 = scmp.ge.s32.totalorder %s16_s18, 4  }
 0x221   :  { %15 = sbr.rel (!%p13_p4) target bundleno = 1 (0x1), region = 66 }

</bundles_post_ra>
